<compile_context>
chip_gen: v7x
topology: tpu7x:2x2x1
jax: 0.10.0
libtpu: 0.0.40
codegen_flags: <defaults>
</compile_context>

<pallas_src>
import functools

import jax
import jax.numpy as jnp
from jax.experimental import pallas as pl
from jax.experimental.pallas import tpu as pltpu


# ----------------------------------------------------------------------------
# In-kernel helper: one 3x3 conv (stride 1, pad 1) + bias + ReLU on the
# flattened, zero-padded spatial grid.
#   src_ref : (Cin, Lext)  activation, Lext = L + 2*E halo (zeros in the halo)
#   w_ref   : (Cout, 9*Cin) packed tap-major weights (tap t = di*3 + dj)
#   b_ref   : (Cout, 1)
# Returns a (Cout, L) f32 value; valid only at interior grid positions
# (border-ring positions are garbage and are masked / discarded by the caller).
# ----------------------------------------------------------------------------
def _conv_stage(src_ref, w_ref, b_ref, *, L, E, Wp):
    cin = src_ref.shape[0]
    cout = w_ref.shape[0]
    # bias folded into the accumulator init
    acc = jnp.broadcast_to(b_ref[...], (cout, L)).astype(jnp.float32)
    t = 0
    for di in range(3):
        for dj in range(3):
            off = E + (di - 1) * Wp + (dj - 1)            # static tap offset
            w_t = w_ref[:, t * cin:(t + 1) * cin]         # (cout, cin)
            x_t = src_ref[:, off:off + L]                 # (cin, L) shifted view
            acc = acc + jnp.dot(w_t, x_t, preferred_element_type=jnp.float32)
            t += 1
    return jnp.maximum(acc, 0.0)


def _fused_kernel(x_ref, w1_ref, b1_ref, w2_ref, b2_ref, mask_ref,
                  o_ref, h_ref, *, Wp):
    """forward(x) = relu(conv2(relu(conv1(x)))) fused in one kernel body."""
    L = o_ref.shape[1]
    E = (x_ref.shape[1] - L) // 2
    # stage 1 ("beggining")
    h = _conv_stage(x_ref, w1_ref, b1_ref, L=L, E=E, Wp=Wp)
    h = h * mask_ref[...]                     # force conv-padding ring to zero
    # hidden activation stays in VMEM scratch (no HBM round trip)
    h_ref[...] = jnp.zeros_like(h_ref)        # zero the halo extension
    h_ref[:, E:E + L] = h
    # stage 2 ("intermediate") on the VMEM-resident hidden activation
    o_ref[...] = _conv_stage(h_ref, w2_ref, b2_ref, L=L, E=E, Wp=Wp
                             ).astype(o_ref.dtype)


def _hidden_kernel(x_ref, w1_ref, b1_ref, o_ref, *, Wp):
    """hidden(x) = relu(conv1(x)) only."""
    L = o_ref.shape[1]
    E = (x_ref.shape[1] - L) // 2
    o_ref[...] = _conv_stage(x_ref, w1_ref, b1_ref, L=L, E=E, Wp=Wp
                             ).astype(o_ref.dtype)


# ----------------------------------------------------------------------------
# JAX-side glue (layout plumbing only — done once per Databank call)
# ----------------------------------------------------------------------------
def _pack_weight(w):
    """(Cout, Cin, 3, 3) -> (Cout, 9*Cin), tap-major (di, dj, ci) columns."""
    cout, cin = w.shape[0], w.shape[1]
    return jnp.transpose(w, (0, 2, 3, 1)).reshape(cout, 9 * cin)


def _flatten_padded(x_nchw, E):
    """NCHW -> (Cin, E + N*Hp*Wp + E) flattened zero-padded grid (+ lane halo)."""
    N, C, H, W = x_nchw.shape
    xp = jnp.pad(jnp.transpose(x_nchw, (1, 0, 2, 3)),
                 ((0, 0), (0, 0), (1, 1), (1, 1)))          # (C, N, Hp, Wp)
    L = N * (H + 2) * (W + 2)
    flat = xp.reshape(C, L)
    return jnp.pad(flat, ((0, 0), (E, E))), L


def _unflatten(out_cl, N, H, W):
    """(Cout, N*Hp*Wp) -> NCHW, keeping only the valid interior positions."""
    C = out_cl.shape[0]
    grid = out_cl.reshape(C, N, H + 2, W + 2)[:, :, 1:H + 1, 1:W + 1]
    return jnp.transpose(grid, (1, 0, 2, 3))


def _full_block(shape):
    return pl.BlockSpec(shape, lambda i: (0, 0))


# ----------------------------------------------------------------------------
# Databank entry points
# ----------------------------------------------------------------------------
@jax.jit
def databank_forward(x, params):
    w1, b1 = params["beggining"]
    w2, b2 = params["intermediate"]
    N, Cin, H, W = x.shape
    C1, C2 = w1.shape[0], w2.shape[0]
    Wp = W + 2
    E = ((Wp + 1 + 127) // 128) * 128          # lane-aligned halo >= Wp + 1
    x_ext, L = _flatten_padded(x, E)
    Lext = L + 2 * E

    # interior mask: 1 at real output positions, 0 on the conv padding ring
    mask = jnp.pad(jnp.ones((N, H, W), jnp.float32),
                   ((0, 0), (1, 1), (1, 1))).reshape(1, L)

    out_flat = pl.pallas_call(
        functools.partial(_fused_kernel, Wp=Wp),
        out_shape=jax.ShapeDtypeStruct((C2, L), jnp.float32),
        grid=(1,),
        in_specs=[
            _full_block((Cin, Lext)),       # padded flattened input
            _full_block((C1, 9 * Cin)),     # conv1 weights (tap-packed)
            _full_block((C1, 1)),           # conv1 bias
            _full_block((C2, 9 * C1)),      # conv2 weights (tap-packed)
            _full_block((C2, 1)),           # conv2 bias
            _full_block((1, L)),            # interior mask
        ],
        out_specs=_full_block((C2, L)),
        scratch_shapes=[pltpu.VMEM((C1, Lext), jnp.float32)],   # hidden act.
        compiler_params=pltpu.CompilerParams(
            dimension_semantics=("arbitrary",)),
    )(x_ext, _pack_weight(w1), b1.reshape(C1, 1),
      _pack_weight(w2), b2.reshape(C2, 1), mask)

    return _unflatten(out_flat, N, H, W)


@jax.jit
def databank_hidden(x, params):
    w1, b1 = params["beggining"]
    N, Cin, H, W = x.shape
    C1 = w1.shape[0]
    Wp = W + 2
    E = ((Wp + 1 + 127) // 128) * 128
    x_ext, L = _flatten_padded(x, E)
    Lext = L + 2 * E

    out_flat = pl.pallas_call(
        functools.partial(_hidden_kernel, Wp=Wp),
        out_shape=jax.ShapeDtypeStruct((C1, L), jnp.float32),
        grid=(1,),
        in_specs=[
            _full_block((Cin, Lext)),
            _full_block((C1, 9 * Cin)),
            _full_block((C1, 1)),
        ],
        out_specs=_full_block((C1, L)),
        compiler_params=pltpu.CompilerParams(
            dimension_semantics=("arbitrary",)),
    )(x_ext, _pack_weight(w1), b1.reshape(C1, 1))

    return _unflatten(out_flat, N, H, W)


# ----------------------------------------------------------------------------
# Pure-JAX reference (correctness check only)
# ----------------------------------------------------------------------------
def _ref_conv_relu(x, w, b):
    y = jax.lax.conv_general_dilated(
        x, w, window_strides=(1, 1), padding=((1, 1), (1, 1)),
        dimension_numbers=("NCHW", "OIHW", "NCHW"))
    return jnp.maximum(y + b[None, :, None, None], 0.0)


if __name__ == "__main__":
    key = jax.random.PRNGKey(0)
    kx, kw1, kb1, kw2, kb2 = jax.random.split(key, 5)

    N, Cin, H, W = 2, 4, 16, 16
    C1, C2 = 8, 8

    x = jax.random.normal(kx, (N, Cin, H, W), dtype=jnp.float32)
    params = {
        "beggining": (
            0.1 * jax.random.normal(kw1, (C1, Cin, 3, 3), dtype=jnp.float32),
            0.01 * jax.random.normal(kb1, (C1,), dtype=jnp.float32),
        ),
        "intermediate": (
            0.1 * jax.random.normal(kw2, (C2, C1, 3, 3), dtype=jnp.float32),
            0.01 * jax.random.normal(kb2, (C2,), dtype=jnp.float32),
        ),
    }

    out = jax.block_until_ready(databank_forward(x, params))
    hid = jax.block_until_ready(databank_hidden(x, params))

    # reference check against XLA conv
    w1, b1 = params["beggining"]
    w2, b2 = params["intermediate"]
    ref_hid = _ref_conv_relu(x, w1, b1)
    ref_out = _ref_conv_relu(ref_hid, w2, b2)

    assert out.shape == (N, C2, H, W)
    assert hid.shape == (N, C1, H, W)
    assert jnp.max(jnp.abs(hid - ref_hid)) < 2e-4
    assert jnp.max(jnp.abs(out - ref_out)) < 2e-4

    print("KERNEL_OK")
</pallas_src>

<mosaic_0001>
module attributes {stable_mosaic.version = 11 : i64} {
  func.func @_fused_kernel(%arg0: i32, %arg1: memref<4x904xf32, #tpu.memory_space<vmem>>, %arg2: memref<8x36xf32, #tpu.memory_space<vmem>>, %arg3: memref<8x1xf32, #tpu.memory_space<vmem>>, %arg4: memref<8x72xf32, #tpu.memory_space<vmem>>, %arg5: memref<8x1xf32, #tpu.memory_space<vmem>>, %arg6: memref<1x648xf32, #tpu.memory_space<vmem>>, %arg7: memref<8x648xf32, #tpu.memory_space<vmem>>, %arg8: memref<8x904xf32, #tpu.memory_space<vmem>>) attributes {dimension_semantics = [#tpu.dimension_semantics<arbitrary>], iteration_bounds = array<i64: 1>, scalar_prefetch = 0 : i64, scratch_operands = 1 : i64, tpu.core_type = #tpu.core_type<tc>, window_params = [{pipeline_mode = #tpu.pipeline_mode<synchronous>, transform_indices = @transform_0, window_bounds = array<i64: 4, 904>}, {pipeline_mode = #tpu.pipeline_mode<synchronous>, transform_indices = @transform_1, window_bounds = array<i64: 8, 36>}, {pipeline_mode = #tpu.pipeline_mode<synchronous>, transform_indices = @transform_2, window_bounds = array<i64: 8, 1>}, {pipeline_mode = #tpu.pipeline_mode<synchronous>, transform_indices = @transform_3, window_bounds = array<i64: 8, 72>}, {pipeline_mode = #tpu.pipeline_mode<synchronous>, transform_indices = @transform_4, window_bounds = array<i64: 8, 1>}, {pipeline_mode = #tpu.pipeline_mode<synchronous>, transform_indices = @transform_5, window_bounds = array<i64: 1, 648>}, {pipeline_mode = #tpu.pipeline_mode<synchronous>, transform_indices = @transform_6, window_bounds = array<i64: 8, 648>}]} {
    %c0 = arith.constant 0 : index
    %c0_0 = arith.constant 0 : index
    %0 = vector.load %arg3[%c0, %c0_0] : memref<8x1xf32, #tpu.memory_space<vmem>>, vector<8x1xf32>
    %1 = vector.shape_cast %0 : vector<8x1xf32> to vector<8x1xf32>
    %2 = vector.broadcast %1 : vector<8x1xf32> to vector<8x648xf32>
    %c0_1 = arith.constant 0 : index
    %c0_2 = arith.constant 0 : index
    %3 = vector.load %arg2[%c0_1, %c0_2] : memref<8x36xf32, #tpu.memory_space<vmem>>, vector<8x4xf32>
    %c0_3 = arith.constant 0 : index
    %c109 = arith.constant 109 : index
    %4 = vector.load %arg1[%c0_3, %c109] : memref<4x904xf32, #tpu.memory_space<vmem>>, vector<4x648xf32>
    %cst = arith.constant dense<0.000000e+00> : vector<8x648xf32>
    %5 = tpu.matmul %3, %4, %cst {dimension_numbers = #tpu.dot_dimension_numbers<[1], [0], [0], [1], [0, 0, 1, 1], [], []>} : vector<8x4xf32>, vector<4x648xf32>, vector<8x648xf32> -> vector<8x648xf32>
    %6 = arith.addf %2, %5 : vector<8x648xf32>
    %c0_4 = arith.constant 0 : index
    %c4 = arith.constant 4 : index
    %7 = vector.load %arg2[%c0_4, %c4] : memref<8x36xf32, #tpu.memory_space<vmem>>, vector<8x4xf32>
    %c0_5 = arith.constant 0 : index
    %c110 = arith.constant 110 : index
    %8 = vector.load %arg1[%c0_5, %c110] : memref<4x904xf32, #tpu.memory_space<vmem>>, vector<4x648xf32>
    %cst_6 = arith.constant dense<0.000000e+00> : vector<8x648xf32>
    %9 = tpu.matmul %7, %8, %cst_6 {dimension_numbers = #tpu.dot_dimension_numbers<[1], [0], [0], [1], [0, 0, 1, 1], [], []>} : vector<8x4xf32>, vector<4x648xf32>, vector<8x648xf32> -> vector<8x648xf32>
    %10 = arith.addf %6, %9 : vector<8x648xf32>
    %c0_7 = arith.constant 0 : index
    %c8 = arith.constant 8 : index
    %11 = vector.load %arg2[%c0_7, %c8] : memref<8x36xf32, #tpu.memory_space<vmem>>, vector<8x4xf32>
    %c0_8 = arith.constant 0 : index
    %c111 = arith.constant 111 : index
    %12 = vector.load %arg1[%c0_8, %c111] : memref<4x904xf32, #tpu.memory_space<vmem>>, vector<4x648xf32>
    %cst_9 = arith.constant dense<0.000000e+00> : vector<8x648xf32>
    %13 = tpu.matmul %11, %12, %cst_9 {dimension_numbers = #tpu.dot_dimension_numbers<[1], [0], [0], [1], [0, 0, 1, 1], [], []>} : vector<8x4xf32>, vector<4x648xf32>, vector<8x648xf32> -> vector<8x648xf32>
    %14 = arith.addf %10, %13 : vector<8x648xf32>
    %c0_10 = arith.constant 0 : index
    %c12 = arith.constant 12 : index
    %15 = vector.load %arg2[%c0_10, %c12] : memref<8x36xf32, #tpu.memory_space<vmem>>, vector<8x4xf32>
    %c0_11 = arith.constant 0 : index
    %c127 = arith.constant 127 : index
    %16 = vector.load %arg1[%c0_11, %c127] : memref<4x904xf32, #tpu.memory_space<vmem>>, vector<4x648xf32>
    %cst_12 = arith.constant dense<0.000000e+00> : vector<8x648xf32>
    %17 = tpu.matmul %15, %16, %cst_12 {dimension_numbers = #tpu.dot_dimension_numbers<[1], [0], [0], [1], [0, 0, 1, 1], [], []>} : vector<8x4xf32>, vector<4x648xf32>, vector<8x648xf32> -> vector<8x648xf32>
    %18 = arith.addf %14, %17 : vector<8x648xf32>
    %c0_13 = arith.constant 0 : index
    %c16 = arith.constant 16 : index
    %19 = vector.load %arg2[%c0_13, %c16] : memref<8x36xf32, #tpu.memory_space<vmem>>, vector<8x4xf32>
    %c0_14 = arith.constant 0 : index
    %c128 = arith.constant 128 : index
    %20 = vector.load %arg1[%c0_14, %c128] : memref<4x904xf32, #tpu.memory_space<vmem>>, vector<4x648xf32>
    %cst_15 = arith.constant dense<0.000000e+00> : vector<8x648xf32>
    %21 = tpu.matmul %19, %20, %cst_15 {dimension_numbers = #tpu.dot_dimension_numbers<[1], [0], [0], [1], [0, 0, 1, 1], [], []>} : vector<8x4xf32>, vector<4x648xf32>, vector<8x648xf32> -> vector<8x648xf32>
    %22 = arith.addf %18, %21 : vector<8x648xf32>
    %c0_16 = arith.constant 0 : index
    %c20 = arith.constant 20 : index
    %23 = vector.load %arg2[%c0_16, %c20] : memref<8x36xf32, #tpu.memory_space<vmem>>, vector<8x4xf32>
    %c0_17 = arith.constant 0 : index
    %c129 = arith.constant 129 : index
    %24 = vector.load %arg1[%c0_17, %c129] : memref<4x904xf32, #tpu.memory_space<vmem>>, vector<4x648xf32>
    %cst_18 = arith.constant dense<0.000000e+00> : vector<8x648xf32>
    %25 = tpu.matmul %23, %24, %cst_18 {dimension_numbers = #tpu.dot_dimension_numbers<[1], [0], [0], [1], [0, 0, 1, 1], [], []>} : vector<8x4xf32>, vector<4x648xf32>, vector<8x648xf32> -> vector<8x648xf32>
    %26 = arith.addf %22, %25 : vector<8x648xf32>
    %c0_19 = arith.constant 0 : index
    %c24 = arith.constant 24 : index
    %27 = vector.load %arg2[%c0_19, %c24] : memref<8x36xf32, #tpu.memory_space<vmem>>, vector<8x4xf32>
    %c0_20 = arith.constant 0 : index
    %c145 = arith.constant 145 : index
    %28 = vector.load %arg1[%c0_20, %c145] : memref<4x904xf32, #tpu.memory_space<vmem>>, vector<4x648xf32>
    %cst_21 = arith.constant dense<0.000000e+00> : vector<8x648xf32>
    %29 = tpu.matmul %27, %28, %cst_21 {dimension_numbers = #tpu.dot_dimension_numbers<[1], [0], [0], [1], [0, 0, 1, 1], [], []>} : vector<8x4xf32>, vector<4x648xf32>, vector<8x648xf32> -> vector<8x648xf32>
    %30 = arith.addf %26, %29 : vector<8x648xf32>
    %c0_22 = arith.constant 0 : index
    %c28 = arith.constant 28 : index
    %31 = vector.load %arg2[%c0_22, %c28] : memref<8x36xf32, #tpu.memory_space<vmem>>, vector<8x4xf32>
    %c0_23 = arith.constant 0 : index
    %c146 = arith.constant 146 : index
    %32 = vector.load %arg1[%c0_23, %c146] : memref<4x904xf32, #tpu.memory_space<vmem>>, vector<4x648xf32>
    %cst_24 = arith.constant dense<0.000000e+00> : vector<8x648xf32>
    %33 = tpu.matmul %31, %32, %cst_24 {dimension_numbers = #tpu.dot_dimension_numbers<[1], [0], [0], [1], [0, 0, 1, 1], [], []>} : vector<8x4xf32>, vector<4x648xf32>, vector<8x648xf32> -> vector<8x648xf32>
    %34 = arith.addf %30, %33 : vector<8x648xf32>
    %c0_25 = arith.constant 0 : index
    %c32 = arith.constant 32 : index
    %35 = vector.load %arg2[%c0_25, %c32] : memref<8x36xf32, #tpu.memory_space<vmem>>, vector<8x4xf32>
    %c0_26 = arith.constant 0 : index
    %c147 = arith.constant 147 : index
    %36 = vector.load %arg1[%c0_26, %c147] : memref<4x904xf32, #tpu.memory_space<vmem>>, vector<4x648xf32>
    %cst_27 = arith.constant dense<0.000000e+00> : vector<8x648xf32>
    %37 = tpu.matmul %35, %36, %cst_27 {dimension_numbers = #tpu.dot_dimension_numbers<[1], [0], [0], [1], [0, 0, 1, 1], [], []>} : vector<8x4xf32>, vector<4x648xf32>, vector<8x648xf32> -> vector<8x648xf32>
    %38 = arith.addf %34, %37 : vector<8x648xf32>
    %cst_28 = arith.constant 0.000000e+00 : f32
    %39 = vector.broadcast %cst_28 : f32 to vector<8x648xf32>
    %40 = arith.maximumf %38, %39 : vector<8x648xf32>
    %c0_29 = arith.constant 0 : index
    %c0_30 = arith.constant 0 : index
    %41 = vector.load %arg6[%c0_29, %c0_30] : memref<1x648xf32, #tpu.memory_space<vmem>>, vector<1x648xf32>
    %42 = vector.broadcast %41 : vector<1x648xf32> to vector<8x648xf32>
    %43 = arith.mulf %40, %42 : vector<8x648xf32>
    %cst_31 = arith.constant 0.000000e+00 : f32
    %44 = vector.broadcast %cst_31 : f32 to vector<8x904xf32>
    %c0_32 = arith.constant 0 : index
    %c0_33 = arith.constant 0 : index
    %45 = vector.load %arg8[%c0_32, %c0_33] : memref<8x904xf32, #tpu.memory_space<vmem>>, vector<8x904xf32>
    tpu.vector_store %arg8[%c0_32, %c0_33], %44 {strides = array<i32>} : memref<8x904xf32, #tpu.memory_space<vmem>>, vector<8x904xf32>,
    %c0_34 = arith.constant 0 : index
    %c128_35 = arith.constant 128 : index
    %46 = vector.load %arg8[%c0_34, %c128_35] : memref<8x904xf32, #tpu.memory_space<vmem>>, vector<8x648xf32>
    tpu.vector_store %arg8[%c0_34, %c128_35], %43 {strides = array<i32>} : memref<8x904xf32, #tpu.memory_space<vmem>>, vector<8x648xf32>,
    %c0_36 = arith.constant 0 : index
    %c0_37 = arith.constant 0 : index
    %47 = vector.load %arg5[%c0_36, %c0_37] : memref<8x1xf32, #tpu.memory_space<vmem>>, vector<8x1xf32>
    %48 = vector.shape_cast %47 : vector<8x1xf32> to vector<8x1xf32>
    %49 = vector.broadcast %48 : vector<8x1xf32> to vector<8x648xf32>
    %c0_38 = arith.constant 0 : index
    %c0_39 = arith.constant 0 : index
    %50 = vector.load %arg4[%c0_38, %c0_39] : memref<8x72xf32, #tpu.memory_space<vmem>>, vector<8x8xf32>
    %c0_40 = arith.constant 0 : index
    %c109_41 = arith.constant 109 : index
    %51 = vector.load %arg8[%c0_40, %c109_41] : memref<8x904xf32, #tpu.memory_space<vmem>>, vector<8x648xf32>
    %cst_42 = arith.constant dense<0.000000e+00> : vector<8x648xf32>
    %52 = tpu.matmul %50, %51, %cst_42 {dimension_numbers = #tpu.dot_dimension_numbers<[1], [0], [0], [1], [0, 0, 1, 1], [], []>} : vector<8x8xf32>, vector<8x648xf32>, vector<8x648xf32> -> vector<8x648xf32>
    %53 = arith.addf %49, %52 : vector<8x648xf32>
    %c0_43 = arith.constant 0 : index
    %c8_44 = arith.constant 8 : index
    %54 = vector.load %arg4[%c0_43, %c8_44] : memref<8x72xf32, #tpu.memory_space<vmem>>, vector<8x8xf32>
    %c0_45 = arith.constant 0 : index
    %c110_46 = arith.constant 110 : index
    %55 = vector.load %arg8[%c0_45, %c110_46] : memref<8x904xf32, #tpu.memory_space<vmem>>, vector<8x648xf32>
    %cst_47 = arith.constant dense<0.000000e+00> : vector<8x648xf32>
    %56 = tpu.matmul %54, %55, %cst_47 {dimension_numbers = #tpu.dot_dimension_numbers<[1], [0], [0], [1], [0, 0, 1, 1], [], []>} : vector<8x8xf32>, vector<8x648xf32>, vector<8x648xf32> -> vector<8x648xf32>
    %57 = arith.addf %53, %56 : vector<8x648xf32>
    %c0_48 = arith.constant 0 : index
    %c16_49 = arith.constant 16 : index
    %58 = vector.load %arg4[%c0_48, %c16_49] : memref<8x72xf32, #tpu.memory_space<vmem>>, vector<8x8xf32>
    %c0_50 = arith.constant 0 : index
    %c111_51 = arith.constant 111 : index
    %59 = vector.load %arg8[%c0_50, %c111_51] : memref<8x904xf32, #tpu.memory_space<vmem>>, vector<8x648xf32>
    %cst_52 = arith.constant dense<0.000000e+00> : vector<8x648xf32>
    %60 = tpu.matmul %58, %59, %cst_52 {dimension_numbers = #tpu.dot_dimension_numbers<[1], [0], [0], [1], [0, 0, 1, 1], [], []>} : vector<8x8xf32>, vector<8x648xf32>, vector<8x648xf32> -> vector<8x648xf32>
    %61 = arith.addf %57, %60 : vector<8x648xf32>
    %c0_53 = arith.constant 0 : index
    %c24_54 = arith.constant 24 : index
    %62 = vector.load %arg4[%c0_53, %c24_54] : memref<8x72xf32, #tpu.memory_space<vmem>>, vector<8x8xf32>
    %c0_55 = arith.constant 0 : index
    %c127_56 = arith.constant 127 : index
    %63 = vector.load %arg8[%c0_55, %c127_56] : memref<8x904xf32, #tpu.memory_space<vmem>>, vector<8x648xf32>
    %cst_57 = arith.constant dense<0.000000e+00> : vector<8x648xf32>
    %64 = tpu.matmul %62, %63, %cst_57 {dimension_numbers = #tpu.dot_dimension_numbers<[1], [0], [0], [1], [0, 0, 1, 1], [], []>} : vector<8x8xf32>, vector<8x648xf32>, vector<8x648xf32> -> vector<8x648xf32>
    %65 = arith.addf %61, %64 : vector<8x648xf32>
    %c0_58 = arith.constant 0 : index
    %c32_59 = arith.constant 32 : index
    %66 = vector.load %arg4[%c0_58, %c32_59] : memref<8x72xf32, #tpu.memory_space<vmem>>, vector<8x8xf32>
    %c0_60 = arith.constant 0 : index
    %c128_61 = arith.constant 128 : index
    %67 = vector.load %arg8[%c0_60, %c128_61] : memref<8x904xf32, #tpu.memory_space<vmem>>, vector<8x648xf32>
    %cst_62 = arith.constant dense<0.000000e+00> : vector<8x648xf32>
    %68 = tpu.matmul %66, %67, %cst_62 {dimension_numbers = #tpu.dot_dimension_numbers<[1], [0], [0], [1], [0, 0, 1, 1], [], []>} : vector<8x8xf32>, vector<8x648xf32>, vector<8x648xf32> -> vector<8x648xf32>
    %69 = arith.addf %65, %68 : vector<8x648xf32>
    %c0_63 = arith.constant 0 : index
    %c40 = arith.constant 40 : index
    %70 = vector.load %arg4[%c0_63, %c40] : memref<8x72xf32, #tpu.memory_space<vmem>>, vector<8x8xf32>
    %c0_64 = arith.constant 0 : index
    %c129_65 = arith.constant 129 : index
    %71 = vector.load %arg8[%c0_64, %c129_65] : memref<8x904xf32, #tpu.memory_space<vmem>>, vector<8x648xf32>
    %cst_66 = arith.constant dense<0.000000e+00> : vector<8x648xf32>
    %72 = tpu.matmul %70, %71, %cst_66 {dimension_numbers = #tpu.dot_dimension_numbers<[1], [0], [0], [1], [0, 0, 1, 1], [], []>} : vector<8x8xf32>, vector<8x648xf32>, vector<8x648xf32> -> vector<8x648xf32>
    %73 = arith.addf %69, %72 : vector<8x648xf32>
    %c0_67 = arith.constant 0 : index
    %c48 = arith.constant 48 : index
    %74 = vector.load %arg4[%c0_67, %c48] : memref<8x72xf32, #tpu.memory_space<vmem>>, vector<8x8xf32>
    %c0_68 = arith.constant 0 : index
    %c145_69 = arith.constant 145 : index
    %75 = vector.load %arg8[%c0_68, %c145_69] : memref<8x904xf32, #tpu.memory_space<vmem>>, vector<8x648xf32>
    %cst_70 = arith.constant dense<0.000000e+00> : vector<8x648xf32>
    %76 = tpu.matmul %74, %75, %cst_70 {dimension_numbers = #tpu.dot_dimension_numbers<[1], [0], [0], [1], [0, 0, 1, 1], [], []>} : vector<8x8xf32>, vector<8x648xf32>, vector<8x648xf32> -> vector<8x648xf32>
    %77 = arith.addf %73, %76 : vector<8x648xf32>
    %c0_71 = arith.constant 0 : index
    %c56 = arith.constant 56 : index
    %78 = vector.load %arg4[%c0_71, %c56] : memref<8x72xf32, #tpu.memory_space<vmem>>, vector<8x8xf32>
    %c0_72 = arith.constant 0 : index
    %c146_73 = arith.constant 146 : index
    %79 = vector.load %arg8[%c0_72, %c146_73] : memref<8x904xf32, #tpu.memory_space<vmem>>, vector<8x648xf32>
    %cst_74 = arith.constant dense<0.000000e+00> : vector<8x648xf32>
    %80 = tpu.matmul %78, %79, %cst_74 {dimension_numbers = #tpu.dot_dimension_numbers<[1], [0], [0], [1], [0, 0, 1, 1], [], []>} : vector<8x8xf32>, vector<8x648xf32>, vector<8x648xf32> -> vector<8x648xf32>
    %81 = arith.addf %77, %80 : vector<8x648xf32>
    %c0_75 = arith.constant 0 : index
    %c64 = arith.constant 64 : index
    %82 = vector.load %arg4[%c0_75, %c64] : memref<8x72xf32, #tpu.memory_space<vmem>>, vector<8x8xf32>
    %c0_76 = arith.constant 0 : index
    %c147_77 = arith.constant 147 : index
    %83 = vector.load %arg8[%c0_76, %c147_77] : memref<8x904xf32, #tpu.memory_space<vmem>>, vector<8x648xf32>
    %cst_78 = arith.constant dense<0.000000e+00> : vector<8x648xf32>
    %84 = tpu.matmul %82, %83, %cst_78 {dimension_numbers = #tpu.dot_dimension_numbers<[1], [0], [0], [1], [0, 0, 1, 1], [], []>} : vector<8x8xf32>, vector<8x648xf32>, vector<8x648xf32> -> vector<8x648xf32>
    %85 = arith.addf %81, %84 : vector<8x648xf32>
    %cst_79 = arith.constant 0.000000e+00 : f32
    %86 = vector.broadcast %cst_79 : f32 to vector<8x648xf32>
    %87 = arith.maximumf %85, %86 : vector<8x648xf32>
    %c0_80 = arith.constant 0 : index
    %c0_81 = arith.constant 0 : index
    %88 = vector.load %arg7[%c0_80, %c0_81] : memref<8x648xf32, #tpu.memory_space<vmem>>, vector<8x648xf32>
    tpu.vector_store %arg7[%c0_80, %c0_81], %87 {strides = array<i32>} : memref<8x648xf32, #tpu.memory_space<vmem>>, vector<8x648xf32>,
    return
  }
  func.func @transform_0(%arg0: i32) -> (i32, i32) {
    %c0_i32 = arith.constant 0 : i32
    %c0_i32_0 = arith.constant 0 : i32
    %c0_i32_1 = arith.constant 0 : i32
    return %c0_i32, %c0_i32_0 : i32, i32
  }
  func.func @transform_1(%arg0: i32) -> (i32, i32) {
    %c0_i32 = arith.constant 0 : i32
    %c0_i32_0 = arith.constant 0 : i32
    %c0_i32_1 = arith.constant 0 : i32
    return %c0_i32, %c0_i32_0 : i32, i32
  }
  func.func @transform_2(%arg0: i32) -> (i32, i32) {
    %c0_i32 = arith.constant 0 : i32
    %c0_i32_0 = arith.constant 0 : i32
    %c0_i32_1 = arith.constant 0 : i32
    return %c0_i32, %c0_i32_0 : i32, i32
  }
  func.func @transform_3(%arg0: i32) -> (i32, i32) {
    %c0_i32 = arith.constant 0 : i32
    %c0_i32_0 = arith.constant 0 : i32
    %c0_i32_1 = arith.constant 0 : i32
    return %c0_i32, %c0_i32_0 : i32, i32
  }
  func.func @transform_4(%arg0: i32) -> (i32, i32) {
    %c0_i32 = arith.constant 0 : i32
    %c0_i32_0 = arith.constant 0 : i32
    %c0_i32_1 = arith.constant 0 : i32
    return %c0_i32, %c0_i32_0 : i32, i32
  }
  func.func @transform_5(%arg0: i32) -> (i32, i32) {
    %c0_i32 = arith.constant 0 : i32
    %c0_i32_0 = arith.constant 0 : i32
    %c0_i32_1 = arith.constant 0 : i32
    return %c0_i32, %c0_i32_0 : i32, i32
  }
  func.func @transform_6(%arg0: i32) -> (i32, i32) {
    %c0_i32 = arith.constant 0 : i32
    %c0_i32_0 = arith.constant 0 : i32
    %c0_i32_1 = arith.constant 0 : i32
    return %c0_i32, %c0_i32_0 : i32, i32
  }
}

</mosaic_0001>

<bundles_post_ra>
// kernel: databank_forward.1
= control target key start
LH: loop header
LB: loop body
LE: loop exit
PB: predicated region body
PF: predicated region fallthrough
CT: control target
= control target key end

     0   :  { %v4940_v2 = vmov 0.0   ;;  %s4941_s25 = smov 19   ;;  %s4942_s28 = smov 18   ;;  %v4956_v15 = vmov 0   ;;  %vm51_vm0 = vcmask 154624   ;;  %vm61_vm1 = vcmask 1043456   ;;  %s5548_s0 = inlined_call_operand.vmem [shape: f32[4,904], index: 0, kind: input, shape index: {}]   ;;  %s5549_s1 = inlined_call_operand.vmem [shape: f32[8,36], index: 1, kind: input, shape index: {}]   ;;  %s5550_s2 = inlined_call_operand.vmem [shape: f32[8,1], index: 2, kind: input, shape index: {}]   ;;  %s5551_s5 = inlined_call_operand.vmem [shape: f32[1,648], index: 5, kind: input, shape index: {}]   ;;  %s5552_s3 = inlined_call_operand.vmem [shape: f32[8,72], index: 3, kind: input, shape index: {}]   ;;  %s5553_s4 = inlined_call_operand.vmem [shape: f32[8,1], index: 4, kind: input, shape index: {}]   ;;  %s5554_s6 = inlined_call_operand.vmem [shape: f32[8,648], index: 6, kind: output, shape index: {}]  }
   0x1   :  { %v31_v0 = vld [vmem:[%s5548_s0 + $0x8] sm:$0xff]  ;;  %v30_v1 = vld [vmem:[%s5548_s0] sm:$0xff]  ;;  %138 = vmatprep.mubr.f32.mxu0 %v4940_v2  ;;  %2436 = vst [vmem:[#allocation2] sm:$0xff] %v4940_v2  ;;  %2442 = vst [vmem:[#allocation2 + $0x30] sm:$0xff] %v4940_v2  ;;  %2560 = vmatprep.mubr.f32.mxu1 %v4940_v2  ;;  %s4943_s7 = smov 124   ;;  %s4944_s8 = smov 17  }
   0x2   :  { %43 = vrot.lane.b32.xlu0 %v31_v0, %s4941_s25  ;;  %v37_v3 = vcombine.high %v31_v0, %v31_v0  ;;  %39 = vrot.lane.b32.xlu1 %v30_v1, %s4941_s25  ;;  %v36_v4 = vcombine.high %v30_v1, %v30_v1  ;;  %v32_v5 = vld [vmem:[%s5548_s0 + $0x10] sm:$0xff]  ;;  %v5021_v7 = vld [vmem:[%s5549_s1] sm:$0xff]  ;;  %s4945_s1 = smov 120   ;;  %s4946_s9 = smov 1   ;;  %vm57_vm2 = vcmask 31744   ;;  %vm318_vm3 = vcmask 146432  }
   0x3   :  { %v38_v6 = vcombine.high %v32_v5, %v32_v5  ;;  %s4947_s10 = smov 116   ;;  %v825_v8 = vld [vmem:[%s5548_s0 + $0x18] sm:$0xf]  ;;  %v5048_v9 = vld [vmem:[%s5548_s0 + $0x4] sm:$0xff]  ;;  %s4948_s15 = smov 127   ;;  %v5063_v11 = vld [vmem:[%s5548_s0 + $0xc] sm:$0xff]  ;;  %4931 = vset.pattern.permute.xlu1 %v4956_v15  ;;  %4932 = vset.pattern.permute.xlu0 %v4956_v15 }
   0x4   :  { %v5054_v10 = vcombine.high %v5048_v9, %v5048_v9  ;;  %s4949_s16 = smov 112   ;;  %v5069_v12 = vcombine.high %v5063_v11, %v5063_v11  ;;  %v5076_v13 = vld [vmem:[%s5548_s0 + $0x14] sm:$0xff]  ;;  %s4950_s21 = smov 108   ;;  %v23_v16 = vld [vmem:[%s5550_s2] sm:$0xff]  ;;  %vm582_vm4 = vcmask 138240   ;;  %vm850_vm5 = vcmask 7168  }
   0x5   :  { %v5083_v14 = vcombine.high %v5076_v13, %v5076_v13  ;;  %s4951_s22 = smov 111   ;;  %s4952_s0 = smov 104   ;;  %vm1361_vm6 = vcmask 1039360   ;;  %vm1625_vm7 = vcmask 908288   ;;  %vm1889_vm8 = vcmask 900096  }
   0x6   :  { %45 = vrot.lane.b32.xlu1 %v37_v3, %s4941_s25  ;;  %41 = vrot.lane.b32.xlu0 %v36_v4, %s4941_s25  ;;  %s4953_s23 = smov 110   ;;  %s4954_s24 = smov 100   ;;  %vm2153_vm9 = vcmask 891904   ;;  %vm2443_vm10 = vcmask 64512  }
   0x7   :  { %s4955_s26 = smov 109   ;;  %s4957_s27 = smov 96  }
   0xa   :  { %49 = vrot.lane.b32.xlu1 %v38_v6, %s4941_s25  ;;  %47 = vrot.lane.b32.xlu0 %v32_v5, %s4941_s25 }
   0xe   :  { %310 = vrot.lane.b32.xlu1 %v31_v0, %s4942_s28  ;;  %308 = vrot.lane.b32.xlu0 %v36_v4, %s4942_s28 }
  0x12   :  { %298 = vrot.lane.b32.xlu1 %v5021_v7, %s4943_s7  ;;  %306 = vrot.lane.b32.xlu0 %v30_v1, %s4942_s28 }
  0x16   :  { %314 = vrot.lane.b32.xlu1 %v32_v5, %s4942_s28  ;;  %312 = vrot.lane.b32.xlu0 %v37_v3, %s4942_s28 }
  0x1a   :  { %572 = vrot.lane.b32.xlu1 %v36_v4, %s4944_s8  ;;  %316 = vrot.lane.b32.xlu0 %v38_v6, %s4942_s28 }
  0x1e   :  { %570 = vrot.lane.b32.xlu1 %v30_v1, %s4944_s8  ;;  %574 = vrot.lane.b32.xlu0 %v31_v0, %s4944_s8 }
  0x22   :  { %576 = vrot.lane.b32.xlu1 %v37_v3, %s4944_s8  ;;  %562 = vrot.lane.b32.xlu0 %v5021_v7, %s4945_s1 }
  0x26   :  { %580 = vrot.lane.b32.xlu1 %v38_v6, %s4944_s8  ;;  %578 = vrot.lane.b32.xlu0 %v32_v5, %s4944_s8 }
  0x2a   :  { %840 = vrot.lane.b32.xlu1 %v31_v0, %s4946_s9  ;;  %838 = vrot.lane.b32.xlu0 %v36_v4, %s4946_s9 }
  0x2e   :  { %827 = vrot.lane.b32.xlu1 %v5021_v7, %s4947_s10  ;;  %836 = vrot.lane.b32.xlu0 %v30_v1, %s4946_s9 }
  0x32   :  { %844 = vrot.lane.b32.xlu1 %v32_v5, %s4946_s9  ;;  %842 = vrot.lane.b32.xlu0 %v37_v3, %s4946_s9 }
  0x36   :  { %848 = vrot.lane.b32.xlu1 %v825_v8, %s4946_s9  ;;  %846 = vrot.lane.b32.xlu0 %v38_v6, %s4946_s9 }
  0x3a   :  { %1351 = vrot.lane.b32.xlu1 %v5054_v10, %s4948_s15  ;;  %1095 = vrot.lane.b32.xlu0 %v5021_v7, %s4949_s16 }
  0x3e   :  { %1349 = vrot.lane.b32.xlu1 %v5048_v9, %s4948_s15  ;;  %1353 = vrot.lane.b32.xlu0 %v5063_v11, %s4948_s15 }
  0x42   :  { %1355 = vrot.lane.b32.xlu1 %v5069_v12, %s4948_s15  ;;  %1341 = vrot.lane.b32.xlu0 %v5021_v7, %s4950_s21 }
  0x46   :  { %1359 = vrot.lane.b32.xlu1 %v5083_v14, %s4948_s15  ;;  %1357 = vrot.lane.b32.xlu0 %v5076_v13, %s4948_s15 }
  0x4a   :  { %1617 = vrot.lane.b32.xlu1 %v5063_v11, %s4951_s22  ;;  %1615 = vrot.lane.b32.xlu0 %v5054_v10, %s4951_s22 }
  0x4e   :  { %1605 = vrot.lane.b32.xlu1 %v5021_v7, %s4952_s0  ;;  %1613 = vrot.lane.b32.xlu0 %v5048_v9, %s4951_s22 }
  0x52   :  { %1621 = vrot.lane.b32.xlu1 %v5076_v13, %s4951_s22  ;;  %1619 = vrot.lane.b32.xlu0 %v5069_v12, %s4951_s22 }
  0x56   :  { %1879 = vrot.lane.b32.xlu1 %v5054_v10, %s4953_s23  ;;  %1623 = vrot.lane.b32.xlu0 %v5083_v14, %s4951_s22 }
  0x5a   :  { %1877 = vrot.lane.b32.xlu1 %v5048_v9, %s4953_s23  ;;  %1881 = vrot.lane.b32.xlu0 %v5063_v11, %s4953_s23 }
  0x5e   :  { %1883 = vrot.lane.b32.xlu1 %v5069_v12, %s4953_s23  ;;  %1869 = vrot.lane.b32.xlu0 %v5021_v7, %s4954_s24 }
  0x62   :  { %1887 = vrot.lane.b32.xlu1 %v5083_v14, %s4953_s23  ;;  %1885 = vrot.lane.b32.xlu0 %v5076_v13, %s4953_s23 }
  0x66   :  { %2145 = vrot.lane.b32.xlu1 %v5063_v11, %s4955_s26  ;;  %2143 = vrot.lane.b32.xlu0 %v5054_v10, %s4955_s26 }
  0x6a   :  { %2133 = vrot.lane.b32.xlu1 %v5021_v7, %s4957_s27  ;;  %2141 = vrot.lane.b32.xlu0 %v5048_v9, %s4955_s26 }
  0x6e   :  { %2149 = vrot.lane.b32.xlu1 %v5076_v13, %s4955_s26  ;;  %2147 = vrot.lane.b32.xlu0 %v5069_v12, %s4955_s26 }
  0x72   :  { %2151 = vrot.lane.b32.xlu0 %v5083_v14, %s4955_s26  ;;  %26 = vperm.xlu1 %4931, %v23_v16  }
  0x74   :  { %v44_v17 = vpop.permute.xlu0 %43  ;;  %v40_v18 = vpop.permute.xlu1 %39 }
  0x76   :  { %2470 = vrot.lane.b32.xlu0 %v4940_v2, %s4941_s25 }
  0x78   :  { %v46_v19 = vpop.permute.xlu1 %45  ;;  %v42_v20 = vpop.permute.xlu0 %41 }
  0x79   :  { %v53_v21 = vsel %vm51_vm0, %v42_v20, %v44_v17  ;;  %v52_v22 = vsel %vm51_vm0, %v40_v18, %v42_v20  ;;  %v54_v26 = vsel %vm51_vm0, %v44_v17, %v46_v19 }
  0x7a   :  { %4693 = vmatprep.subr.msk.mxu0 %vm61_vm1, %v53_v21 }
  0x7b   :  { %4694 = vmatpush1.msk.msra.mxu0 %vm61_vm1, %v52_v22 }
  0x7c   :  { %v50_v23 = vpop.permute.xlu1 %49  ;;  %4695 = vmatmul.mubr.msk.f32.vlgmr.msra.gmra.mrb[0].mxu0 %vm57_vm2, %v5021_v7  ;;  %v48_v24 = vpop.permute.xlu0 %47 }
  0x7d   :  { %v55_v25 = vsel %vm51_vm0, %v46_v19, %v48_v24  ;;  %209 = vmatprep.mubr.f32.mxu0 %v4940_v2  ;;  %v56_v27 = vsel %vm51_vm0, %v48_v24, %v50_v23 }
  0x7e   :  { %4696 = vmatprep.subr.msk.mxu0 %vm61_vm1, %v55_v25 }
  0x7f   :  { %4697 = vmatpush1.msk.msra.mxu0 %vm61_vm1, %v54_v26 }
  0x80   :  { %v311_v28 = vpop.permute.xlu1 %310  ;;  %4698 = vmatmul.mubr.msk.f32.vlgmr.msra.gmra.mrb[2].mxu0 %vm57_vm2, %v5021_v7  ;;  %4699 = vmatprep.subr.msk.mxu0 %vm61_vm1, %v50_v23  ;;  %v309_v29 = vpop.permute.xlu0 %308 }
  0x81   :  { %4700 = vmatpush1.msk.msra.mxu0 %vm61_vm1, %v56_v27  ;;  %v320_v30 = vsel %vm318_vm3, %v309_v29, %v311_v28  ;;  %280 = vmatprep.mubr.f32.mxu0 %v4940_v2 }
  0x82   :  { %4702 = vmatprep.subr.msk.mxu0 %vm61_vm1, %v320_v30 }
  0x84   :  { %v299_v31 = vpop.permute.xlu1 %298  ;;  %4701 = vmatmul.mubr.msk.f32.vlgmr.msra.gmra.mrb[4].mxu0 %vm57_vm2, %v5021_v7  ;;  %v307_v32 = vpop.permute.xlu0 %306 }
  0x85   :  { %v319_v33 = vsel %vm318_vm3, %v307_v32, %v309_v29  ;;  %402 = vmatprep.mubr.f32.mxu0 %v4940_v2 }
  0x86   :  { %4703 = vmatpush1.msk.msra.mxu0 %vm61_vm1, %v319_v33 }
  0x88   :  { %v315_v34 = vpop.permute.xlu1 %314  ;;  %4704 = vmatmul.mubr.msk.f32.vlgmr.msra.gmra.mrb[0].mxu0 %vm57_vm2, %v299_v31  ;;  %v313_v35 = vpop.permute.xlu0 %312 }
  0x89   :  { %v321_v36 = vsel %vm318_vm3, %v311_v28, %v313_v35  ;;  %v322_v37 = vsel %vm318_vm3, %v313_v35, %v315_v34  ;;  %473 = vmatprep.mubr.f32.mxu0 %v4940_v2 }
  0x8a   :  { %4705 = vmatprep.subr.msk.mxu0 %vm61_vm1, %v322_v37 }
  0x8b   :  { %4706 = vmatpush1.msk.msra.mxu0 %vm61_vm1, %v321_v36 }
  0x8c   :  { %v573_v38 = vpop.permute.xlu1 %572  ;;  %4707 = vmatmul.mubr.msk.f32.vlgmr.msra.gmra.mrb[2].mxu0 %vm57_vm2, %v299_v31  ;;  %v317_v39 = vpop.permute.xlu0 %316 }
  0x8d   :  { %v323_v40 = vsel %vm318_vm3, %v315_v34, %v317_v39  ;;  %4708 = vmatprep.subr.msk.mxu0 %vm61_vm1, %v317_v39  ;;  %544 = vmatprep.mubr.f32.mxu0 %v4940_v2 }
  0x8e   :  { %4709 = vmatpush1.msk.msra.mxu0 %vm61_vm1, %v323_v40 }
  0x90   :  { %v571_v41 = vpop.permute.xlu1 %570  ;;  %4710 = vmatmul.mubr.msk.f32.vlgmr.msra.gmra.mrb[4].mxu0 %vm57_vm2, %v299_v31  ;;  %v575_v42 = vpop.permute.xlu0 %574 }
  0x91   :  { %v583_v43 = vsel %vm582_vm4, %v571_v41, %v573_v38  ;;  %v584_v44 = vsel %vm582_vm4, %v573_v38, %v575_v42  ;;  %666 = vmatprep.mubr.f32.mxu0 %v4940_v2 }
  0x92   :  { %4711 = vmatprep.subr.msk.mxu0 %vm61_vm1, %v584_v44 }
  0x93   :  { %4712 = vmatpush1.msk.msra.mxu0 %vm61_vm1, %v583_v43 }
  0x94   :  { %v577_v45 = vpop.permute.xlu1 %576  ;;  %v563_v46 = vpop.permute.xlu0 %562 }
  0x95   :  { %4713 = vmatmul.mubr.msk.f32.vlgmr.msra.gmra.mrb[0].mxu0 %vm57_vm2, %v563_v46  ;;  %v585_v50 = vsel %vm582_vm4, %v575_v42, %v577_v45 }
  0x96   :  { %737 = vmatprep.mubr.f32.mxu0 %v4940_v2 }
  0x98   :  { %v581_v47 = vpop.permute.xlu1 %580  ;;  %v579_v48 = vpop.permute.xlu0 %578 }
  0x99   :  { %v586_v49 = vsel %vm582_vm4, %v577_v45, %v579_v48  ;;  %v587_v51 = vsel %vm582_vm4, %v579_v48, %v581_v47 }
  0x9a   :  { %4714 = vmatprep.subr.msk.mxu0 %vm61_vm1, %v586_v49 }
  0x9b   :  { %4715 = vmatpush1.msk.msra.mxu0 %vm61_vm1, %v585_v50 }
  0x9c   :  { %v841_v52 = vpop.permute.xlu1 %840  ;;  %4716 = vmatmul.mubr.msk.f32.vlgmr.msra.gmra.mrb[2].mxu0 %vm57_vm2, %v563_v46  ;;  %4717 = vmatprep.subr.msk.mxu0 %vm61_vm1, %v581_v47  ;;  %v839_v53 = vpop.permute.xlu0 %838 }
  0x9d   :  { %v852_v54 = vsel %vm850_vm5, %v839_v53, %v841_v52  ;;  %4718 = vmatpush1.msk.msra.mxu0 %vm61_vm1, %v587_v51  ;;  %808 = vmatprep.mubr.f32.mxu0 %v4940_v2 }
  0x9e   :  { %4720 = vmatprep.subr.msk.mxu0 %vm61_vm1, %v852_v54 }
  0xa0   :  { %v828_v55 = vpop.permute.xlu1 %827  ;;  %4719 = vmatmul.mubr.msk.f32.vlgmr.msra.gmra.mrb[4].mxu0 %vm57_vm2, %v563_v46  ;;  %v837_v56 = vpop.permute.xlu0 %836 }
  0xa1   :  { %v851_v57 = vsel %vm850_vm5, %v837_v56, %v839_v53  ;;  %935 = vmatprep.mubr.f32.mxu0 %v4940_v2  ;;  %v2398_v56 = vld [vmem:[%s5551_s5] sm:$0x3f] }
  0xa2   :  { %4721 = vmatpush1.msk.msra.mxu0 %vm61_vm1, %v851_v57 }
  0xa4   :  { %v845_v58 = vpop.permute.xlu1 %844  ;;  %4722 = vmatmul.mubr.msk.f32.vlgmr.msra.gmra.mrb[0].mxu0 %vm57_vm2, %v828_v55  ;;  %v843_v59 = vpop.permute.xlu0 %842 }
  0xa5   :  { %v853_v60 = vsel %vm850_vm5, %v841_v52, %v843_v59  ;;  %v854_v61 = vsel %vm850_vm5, %v843_v59, %v845_v58  ;;  %1006 = vmatprep.mubr.f32.mxu0 %v4940_v2  ;;  %v2400_v52 = vlaneseq }
  0xa6   :  { %4723 = vmatprep.subr.msk.mxu0 %vm61_vm1, %v854_v61 }
  0xa7   :  { %4724 = vmatpush1.msk.msra.mxu0 %vm61_vm1, %v853_v60  ;;  %v2401_v53 = vshrl.u32 %v2400_v52, 7 }
  0xa8   :  { %v849_v62 = vpop.permute.xlu1 %848  ;;  %4725 = vmatmul.mubr.msk.f32.vlgmr.msra.gmra.mrb[2].mxu0 %vm57_vm2, %v828_v55  ;;  %v847_v63 = vpop.permute.xlu0 %846 }
  0xa9   :  { %v855_v0 = vsel %vm850_vm5, %v845_v58, %v847_v63  ;;  %v856_v1 = vsel %vm850_vm5, %v847_v63, %v849_v62  ;;  %1077 = vmatprep.mubr.f32.mxu0 %v4940_v2  ;;  %v2402_v54 = vsub.s32 0, %v2401_v53  ;;  %v2406_v57 = vsub.s32 1, %v2401_v53 }
  0xaa   :  { %4726 = vmatprep.subr.msk.mxu0 %vm61_vm1, %v856_v1  ;;  %v2410_v62 = vsub.s32 2, %v2401_v53  ;;  %v2414_v1 = vsub.s32 3, %v2401_v53 }
  0xab   :  { %4727 = vmatpush1.msk.msra.mxu0 %vm61_vm1, %v855_v0  ;;  %v2403_v60 = vrot.slane %v2398_v56, %v2402_v54  ;;  %v2407_v0 = vrot.slane %v2398_v56, %v2406_v57 }
  0xac   :  { %v1352_v3 = vpop.permute.xlu1 %1351  ;;  %4728 = vmatmul.mubr.msk.f32.vlgmr.msra.gmra.mrb[4].mxu0 %vm57_vm2, %v828_v55  ;;  %v1096_v4 = vpop.permute.xlu0 %1095  ;;  %4729 = vmatprep.subr.msk.mxu0 %vm61_vm1, %v5054_v10 }
  0xad   :  { %4730 = vmatpush1.msk.msra.mxu0 %vm61_vm1, %v5048_v9  ;;  %1181 = vmatprep.mubr.f32.mxu0 %v4940_v2 }
  0xae   :  { %4732 = vmatprep.subr.msk.mxu0 %vm61_vm1, %v5069_v12 }
  0xb0   :  { %v1350_v5 = vpop.permute.xlu1 %1349  ;;  %4731 = vmatmul.mubr.msk.f32.vlgmr.msra.gmra.mrb[0].mxu0 %vm57_vm2, %v1096_v4  ;;  %v1354_v6 = vpop.permute.xlu0 %1353 }
  0xb1   :  { %4733 = vmatpush1.msk.msra.mxu0 %vm61_vm1, %v5063_v11  ;;  %1252 = vmatprep.mubr.f32.mxu0 %v4940_v2  ;;  %v1363_v9 = vsel %vm1361_vm6, %v1352_v3, %v1354_v6  ;;  %v1362_v10 = vsel %vm1361_vm6, %v1350_v5, %v1352_v3 }
  0xb2   :  { %4735 = vmatprep.subr.msk.mxu0 %vm61_vm1, %v5083_v14 }
  0xb4   :  { %v1356_v7 = vpop.permute.xlu1 %1355  ;;  %4734 = vmatmul.mubr.msk.f32.vlgmr.msra.gmra.mrb[2].mxu0 %vm57_vm2, %v1096_v4  ;;  %v1342_v8 = vpop.permute.xlu0 %1341 }
  0xb5   :  { %4736 = vmatpush1.msk.msra.mxu0 %vm61_vm1, %v5076_v13  ;;  %1323 = vmatprep.mubr.f32.mxu0 %v4940_v2  ;;  %v1364_v13 = vsel %vm1361_vm6, %v1354_v6, %v1356_v7 }
  0xb6   :  { %4738 = vmatprep.subr.msk.mxu0 %vm61_vm1, %v1363_v9 }
  0xb8   :  { %v1360_v11 = vpop.permute.xlu1 %1359  ;;  %4737 = vmatmul.mubr.msk.f32.vlgmr.msra.gmra.mrb[4].mxu0 %vm57_vm2, %v1096_v4  ;;  %v1358_v12 = vpop.permute.xlu0 %1357 }
  0xb9   :  { %4739 = vmatpush1.msk.msra.mxu0 %vm61_vm1, %v1362_v10  ;;  %v1365_v14 = vsel %vm1361_vm6, %v1356_v7, %v1358_v12  ;;  %1445 = vmatprep.mubr.f32.mxu0 %v4940_v2  ;;  %v1366_v17 = vsel %vm1361_vm6, %v1358_v12, %v1360_v11  ;;  %v2418_v10 = vsub.s32 4, %v2401_v53 }
  0xba   :  { %4741 = vmatprep.subr.msk.mxu0 %vm61_vm1, %v1365_v14  ;;  %v2415_v14 = vrot.slane %v2398_v56, %v2414_v1 }
  0xbc   :  { %v1618_v15 = vpop.permute.xlu1 %1617  ;;  %4740 = vmatmul.mubr.msk.f32.vlgmr.msra.gmra.mrb[0].mxu0 %vm57_vm2, %v1342_v8  ;;  %v1616_v16 = vpop.permute.xlu0 %1615 }
  0xbd   :  { %4742 = vmatpush1.msk.msra.mxu0 %vm61_vm1, %v1364_v13  ;;  %1516 = vmatprep.mubr.f32.mxu0 %v4940_v2  ;;  %v1627_v20 = vsel %vm1625_vm7, %v1616_v16, %v1618_v15  ;;  %v2422_v13 = vsub.s32 5, %v2401_v53 }
  0xbe   :  { %4744 = vmatprep.subr.msk.mxu0 %vm61_vm1, %v1360_v11 }
  0xc0   :  { %v1606_v18 = vpop.permute.xlu1 %1605  ;;  %4743 = vmatmul.mubr.msk.f32.vlgmr.msra.gmra.mrb[2].mxu0 %vm57_vm2, %v1342_v8  ;;  %v1614_v19 = vpop.permute.xlu0 %1613 }
  0xc1   :  { %4745 = vmatpush1.msk.msra.mxu0 %vm61_vm1, %v1366_v17  ;;  %1587 = vmatprep.mubr.f32.mxu0 %v4940_v2  ;;  %v1626_v21 = vsel %vm1625_vm7, %v1614_v19, %v1616_v16 }
  0xc2   :  { %4747 = vmatprep.subr.msk.mxu0 %vm61_vm1, %v1627_v20  ;;  %v2419_v20 = vrot.slane %v2398_v56, %v2418_v10 }
  0xc4   :  { %v1622_v22 = vpop.permute.xlu1 %1621  ;;  %4746 = vmatmul.mubr.msk.f32.vlgmr.msra.gmra.mrb[4].mxu0 %vm57_vm2, %v1342_v8  ;;  %v1620_v23 = vpop.permute.xlu0 %1619  ;;  %v2411_v8 = vrot.slane %v2398_v56, %v2410_v62 }
  0xc5   :  { %4748 = vmatpush1.msk.msra.mxu0 %vm61_vm1, %v1626_v21  ;;  %v1629_v24 = vsel %vm1625_vm7, %v1620_v23, %v1622_v22  ;;  %1709 = vmatprep.mubr.f32.mxu0 %v4940_v2  ;;  %v1628_v25 = vsel %vm1625_vm7, %v1618_v15, %v1620_v23 }
  0xc6   :  { %4750 = vmatprep.subr.msk.mxu0 %vm61_vm1, %v1629_v24  ;;  %v2423_v24 = vrot.slane %v2398_v56, %v2422_v13 }
  0xc8   :  { %v1880_v26 = vpop.permute.xlu1 %1879  ;;  %4749 = vmatmul.mubr.msk.f32.vlgmr.msra.gmra.mrb[0].mxu0 %vm57_vm2, %v1606_v18  ;;  %v1624_v27 = vpop.permute.xlu0 %1623 }
  0xc9   :  { %4751 = vmatpush1.msk.msra.mxu0 %vm61_vm1, %v1628_v25  ;;  %1780 = vmatprep.mubr.f32.mxu0 %v4940_v2  ;;  %v1630_v28 = vsel %vm1625_vm7, %v1622_v22, %v1624_v27 }
  0xca   :  { %4753 = vmatprep.subr.msk.mxu0 %vm61_vm1, %v1624_v27 }
  0xcc   :  { %v1878_v29 = vpop.permute.xlu1 %1877  ;;  %4752 = vmatmul.mubr.msk.f32.vlgmr.msra.gmra.mrb[2].mxu0 %vm57_vm2, %v1606_v18  ;;  %v1882_v30 = vpop.permute.xlu0 %1881 }
  0xcd   :  { %4754 = vmatpush1.msk.msra.mxu0 %vm61_vm1, %v1630_v28  ;;  %v1891_v31 = vsel %vm1889_vm8, %v1880_v26, %v1882_v30  ;;  %1851 = vmatprep.mubr.f32.mxu0 %v4940_v2  ;;  %v1890_v32 = vsel %vm1889_vm8, %v1878_v29, %v1880_v26  ;;  %v5321_v29 = vld [vmem:[%s5552_s3] sm:$0xff]  ;;  %s4958_s3 = smov 88  }
  0xce   :  { %4756 = vmatprep.subr.msk.mxu0 %vm61_vm1, %v1891_v31 }
  0xd0   :  { %v1884_v33 = vpop.permute.xlu1 %1883  ;;  %4755 = vmatmul.mubr.msk.f32.vlgmr.msra.gmra.mrb[4].mxu0 %vm57_vm2, %v1606_v18  ;;  %v1870_v34 = vpop.permute.xlu0 %1869 }
  0xd1   :  { %4757 = vmatpush1.msk.msra.mxu0 %vm61_vm1, %v1890_v32  ;;  %1973 = vmatprep.mubr.f32.mxu0 %v4940_v2  ;;  %v1892_v38 = vsel %vm1889_vm8, %v1882_v30, %v1884_v33  ;;  %v2451_v32 = vld [vmem:[%s5553_s4] sm:$0xff] }
  0xd4   :  { %v1888_v35 = vpop.permute.xlu1 %1887  ;;  %4758 = vmatmul.mubr.msk.f32.vlgmr.msra.gmra.mrb[0].mxu0 %vm57_vm2, %v1870_v34  ;;  %v1886_v36 = vpop.permute.xlu0 %1885 }
  0xd5   :  { %v1893_v37 = vsel %vm1889_vm8, %v1884_v33, %v1886_v36  ;;  %2044 = vmatprep.mubr.f32.mxu0 %v4940_v2  ;;  %v1894_v39 = vsel %vm1889_vm8, %v1886_v36, %v1888_v35 }
  0xd6   :  { %4759 = vmatprep.subr.msk.mxu0 %vm61_vm1, %v1893_v37 }
  0xd7   :  { %4760 = vmatpush1.msk.msra.mxu0 %vm61_vm1, %v1892_v38 }
  0xd8   :  { %v2146_v40 = vpop.permute.xlu1 %2145  ;;  %4761 = vmatmul.mubr.msk.f32.vlgmr.msra.gmra.mrb[2].mxu0 %vm57_vm2, %v1870_v34  ;;  %4762 = vmatprep.subr.msk.mxu0 %vm61_vm1, %v1888_v35  ;;  %v2144_v41 = vpop.permute.xlu0 %2143 }
  0xd9   :  { %v2155_v42 = vsel %vm2153_vm9, %v2144_v41, %v2146_v40  ;;  %4763 = vmatpush1.msk.msra.mxu0 %vm61_vm1, %v1894_v39  ;;  %2115 = vmatprep.mubr.f32.mxu0 %v4940_v2 }
  0xda   :  { %4765 = vmatprep.subr.msk.mxu0 %vm61_vm1, %v2155_v42 }
  0xdc   :  { %v2134_v43 = vpop.permute.xlu1 %2133  ;;  %4764 = vmatmul.mubr.msk.f32.vlgmr.msra.gmra.mrb[4].mxu0 %vm57_vm2, %v1870_v34  ;;  %v2142_v44 = vpop.permute.xlu0 %2141 }
  0xdd   :  { %v2154_v45 = vsel %vm2153_vm9, %v2142_v44, %v2144_v41  ;;  %2237 = vmatprep.mubr.f32.mxu0 %v4940_v2 }
  0xde   :  { %4766 = vmatpush1.msk.msra.mxu0 %vm61_vm1, %v2154_v45 }
  0xe0   :  { %v2150_v46 = vpop.permute.xlu1 %2149  ;;  %4767 = vmatmul.mubr.msk.f32.vlgmr.msra.gmra.mrb[0].mxu0 %vm57_vm2, %v2134_v43  ;;  %v2148_v47 = vpop.permute.xlu0 %2147 }
  0xe1   :  { %v2156_v48 = vsel %vm2153_vm9, %v2146_v40, %v2148_v47  ;;  %v2157_v49 = vsel %vm2153_vm9, %v2148_v47, %v2150_v46  ;;  %2308 = vmatprep.mubr.f32.mxu0 %v4940_v2 }
  0xe2   :  { %4768 = vmatprep.subr.msk.mxu0 %vm61_vm1, %v2157_v49 }
  0xe3   :  { %4769 = vmatpush1.msk.msra.mxu0 %vm61_vm1, %v2156_v48 }
  0xe4   :  { %4770 = vmatmul.mubr.msk.f32.vlgmr.msra.gmra.mrb[2].mxu0 %vm57_vm2, %v2134_v43  ;;  %v2152_v50 = vpop.permute.xlu0 %2151 }
  0xe5   :  { %v2158_v51 = vsel %vm2153_vm9, %v2150_v46, %v2152_v50  ;;  %4771 = vmatprep.subr.msk.mxu0 %vm61_vm1, %v2152_v50  ;;  %2379 = vmatprep.mubr.f32.mxu0 %v4940_v2 }
  0xe6   :  { %4772 = vmatpush1.msk.msra.mxu0 %vm61_vm1, %v2158_v51 }
  0xe8   :  { %4773 = vmatmul.mubr.msk.f32.vlgmr.msra.gmra.mrb[4].mxu0 %vm57_vm2, %v2134_v43  ;;  %v2471_v31 = vpop.permute.xlu0 %2470 }
  0xf1   :  { %v27_v55 = vpop.permute.xlu1 %26 }
 0x1b3   :  { %v2239_v58 = vpop.f32.mrb[0].mxu0 }
 0x1b4   :  { %v4801_v59 = vadd.f32 %v2239_v58, %v27_v55  ;;  %v2241_v61 = vpop.f32.mrb[1].mxu0 }
 0x1b5   :  { %v4802_v63 = vadd.f32 %v2241_v61, %v27_v55 }
 0x1b6   :  { %v2392_v3 = vmax.f32 %v4801_v59, 0.0 }
 0x1b7   :  { %v2393_v4 = vmax.f32 %v4802_v63, 0.0  ;;  %v2310_v5 = vpop.f32.mrb[2].mxu0 }
 0x1b8   :  { %v5295_v6 = vmul.f32 %v2403_v60, %v2392_v3  ;;  %v4803_v7 = vadd.f32 %v2310_v5, %v27_v55  ;;  %v2312_v9 = vpop.f32.mrb[3].mxu0 }
 0x1b9   :  { %v5297_v11 = vmul.f32 %v2407_v0, %v2393_v4  ;;  %v4804_v12 = vadd.f32 %v2312_v9, %v27_v55 }
 0x1ba   :  { %v2394_v15 = vmax.f32 %v4803_v7, 0.0  ;;  %2472 = vrot.lane.b32.xlu0 %v5295_v6, %s4941_s25 }
 0x1bb   :  { %v2395_v16 = vmax.f32 %v4804_v12, 0.0  ;;  %v2381_v17 = vpop.f32.mrb[4].mxu0  ;;  %2474 = vrot.lane.b32.xlu1 %v5297_v11, %s4941_s25 }
 0x1bc   :  { %v5303_v18 = vmul.f32 %v2411_v8, %v2394_v15  ;;  %v4805_v19 = vadd.f32 %v2381_v17, %v27_v55  ;;  %v2383_v21 = vpop.f32.mrb[5].mxu0 }
 0x1bd   :  { %v5305_v22 = vmul.f32 %v2415_v14, %v2395_v16  ;;  %v4806_v23 = vadd.f32 %v2383_v21, %v27_v55  ;;  %v5468_v21 = vld [vmem:[#allocation2] sm:$0xff] }
 0x1be   :  { %v2396_v25 = vmax.f32 %v4805_v19, 0.0  ;;  %2719 = vrot.lane.b32.xlu0 %v5295_v6, %s4942_s28 }
 0x1bf   :  { %v2397_v26 = vmax.f32 %v4806_v23, 0.0  ;;  %2721 = vrot.lane.b32.xlu1 %v5297_v11, %s4942_s28 }
 0x1c0   :  { %v5311_v27 = vmul.f32 %v2419_v20, %v2396_v25 }
 0x1c1   :  { %v2435_v28 = vmul.f32 %v2423_v24, %v2397_v26 }
 0x1c2   :  { %2478 = vrot.lane.b32.xlu0 %v5305_v22, %s4941_s25 }
 0x1c3   :  { %2450 = vst.msk [vmem:[#allocation2 + $0x30] sm:$0xff] %vm2443_vm10, %v2435_v28  ;;  %2476 = vrot.lane.b32.xlu1 %v5303_v18, %s4941_s25 }
 0x1c6   :  { %2717 = vrot.lane.b32.xlu0 %v4940_v2, %s4942_s28 }
 0x1c7   :  { %2715 = vrot.lane.b32.xlu1 %v5321_v29, %s4945_s1 }
 0x1ca   :  { %2723 = vrot.lane.b32.xlu0 %v5303_v18, %s4942_s28  ;;  %v5365_v30 = vld [vmem:[#allocation2 + $0x30] sm:$0xff] }
 0x1cb   :  { %2480 = vrot.lane.b32.xlu1 %v5311_v27, %s4941_s25  ;;  %s4959_s25 = smov 80  }
 0x1ce   :  { %2967 = vrot.lane.b32.xlu0 %v5297_v11, %s4944_s8 }
 0x1cf   :  { %2725 = vrot.lane.b32.xlu1 %v5305_v22, %s4942_s28 }
 0x1d2   :  { %2727 = vrot.lane.b32.xlu0 %v5311_v27, %s4942_s28  ;;  %s4960_s28 = smov 72  }
 0x1d3   :  { %2965 = vrot.lane.b32.xlu1 %v5295_v6, %s4944_s8 }
 0x1d6   :  { %2961 = vrot.lane.b32.xlu0 %v5321_v29, %s4949_s16 }
 0x1d7   :  { %2963 = vrot.lane.b32.xlu1 %v4940_v2, %s4944_s8 }
 0x1da   :  { %2971 = vrot.lane.b32.xlu0 %v5305_v22, %s4944_s8 }
 0x1db   :  { %2969 = vrot.lane.b32.xlu1 %v5303_v18, %s4944_s8 }
 0x1de   :  { %3225 = vrot.lane.b32.xlu0 %v5295_v6, %s4946_s9 }
 0x1df   :  { %3227 = vrot.lane.b32.xlu1 %v5297_v11, %s4946_s9 }
 0x1e2   :  { %3223 = vrot.lane.b32.xlu0 %v4940_v2, %s4946_s9 }
 0x1e3   :  { %2973 = vrot.lane.b32.xlu1 %v5311_v27, %s4944_s8  ;;  %s4961_s8 = smov 64  }
 0x1e6   :  { %3229 = vrot.lane.b32.xlu0 %v5303_v18, %s4946_s9 }
 0x1e7   :  { %3214 = vrot.lane.b32.xlu1 %v5321_v29, %s4952_s0 }
 0x1ea   :  { %3233 = vrot.lane.b32.xlu0 %v5311_v27, %s4946_s9 }
 0x1eb   :  { %3231 = vrot.lane.b32.xlu1 %v5305_v22, %s4946_s9 }
 0x1ee   :  { %3470 = vrot.lane.b32.xlu0 %v5321_v29, %s4957_s27 }
 0x1ef   :  { %3235 = vrot.lane.b32.xlu1 %v5365_v30, %s4946_s9 }
 0x1f2   :  { %3699 = vrot.lane.b32.xlu0 %v5303_v18, %s4948_s15 }
 0x1f3   :  { %3697 = vrot.lane.b32.xlu1 %v5297_v11, %s4948_s15 }
 0x1f6   :  { %3693 = vrot.lane.b32.xlu0 %v5321_v29, %s4958_s3 }
 0x1f7   :  { %3695 = vrot.lane.b32.xlu1 %v5295_v6, %s4948_s15 }
 0x1fa   :  { %3703 = vrot.lane.b32.xlu0 %v5311_v27, %s4948_s15 }
 0x1fb   :  { %3701 = vrot.lane.b32.xlu1 %v5305_v22, %s4948_s15 }
 0x1fe   :  { %3943 = vrot.lane.b32.xlu0 %v5297_v11, %s4951_s22 }
 0x1ff   :  { %3945 = vrot.lane.b32.xlu1 %v5303_v18, %s4951_s22 }
 0x202   :  { %3941 = vrot.lane.b32.xlu0 %v5295_v6, %s4951_s22 }
 0x203   :  { %3939 = vrot.lane.b32.xlu1 %v5321_v29, %s4959_s25 }
 0x206   :  { %3947 = vrot.lane.b32.xlu0 %v5305_v22, %s4951_s22 }
 0x207   :  { %3705 = vrot.lane.b32.xlu1 %v5365_v30, %s4948_s15 }
 0x20a   :  { %4191 = vrot.lane.b32.xlu0 %v5303_v18, %s4953_s23 }
 0x20b   :  { %3949 = vrot.lane.b32.xlu1 %v5311_v27, %s4951_s22 }
 0x20e   :  { %3951 = vrot.lane.b32.xlu0 %v5365_v30, %s4951_s22 }
 0x20f   :  { %4189 = vrot.lane.b32.xlu1 %v5297_v11, %s4953_s23 }
 0x212   :  { %4185 = vrot.lane.b32.xlu0 %v5321_v29, %s4960_s28 }
 0x213   :  { %4187 = vrot.lane.b32.xlu1 %v5295_v6, %s4953_s23 }
 0x216   :  { %4195 = vrot.lane.b32.xlu0 %v5311_v27, %s4953_s23 }
 0x217   :  { %4193 = vrot.lane.b32.xlu1 %v5305_v22, %s4953_s23 }
 0x21a   :  { %4435 = vrot.lane.b32.xlu0 %v5297_v11, %s4955_s26 }
 0x21b   :  { %4437 = vrot.lane.b32.xlu1 %v5303_v18, %s4955_s26 }
 0x21e   :  { %4433 = vrot.lane.b32.xlu0 %v5295_v6, %s4955_s26 }
 0x21f   :  { %4197 = vrot.lane.b32.xlu1 %v5365_v30, %s4953_s23 }
 0x222   :  { %4439 = vrot.lane.b32.xlu0 %v5305_v22, %s4955_s26 }
 0x223   :  { %4431 = vrot.lane.b32.xlu1 %v5321_v29, %s4961_s8 }
 0x226   :  { %4443 = vrot.lane.b32.xlu0 %v5365_v30, %s4955_s26 }
 0x227   :  { %4441 = vrot.lane.b32.xlu1 %v5311_v27, %s4955_s26 }
 0x22b   :  { %2454 = vperm.xlu1 %4931, %v2451_v32  }
 0x22c   :  { %v2473_v33 = vpop.permute.xlu0 %2472 }
 0x22d   :  { %v2475_v34 = vpop.permute.xlu1 %2474  ;;  %v2482_v36 = vsel %vm51_vm0, %v2471_v31, %v2473_v33 }
 0x22e   :  { %v2483_v35 = vsel %vm51_vm0, %v2473_v33, %v2475_v34 }
 0x22f   :  { %2496 = vmatprep.subr.mxu1 %v2483_v35 }
 0x230   :  { %2497 = vmatpush1.msra.mxu1 %v2482_v36  ;;  %v2720_v37 = vpop.permute.xlu0 %2719 }
 0x231   :  { %v2722_v38 = vpop.permute.xlu1 %2721  ;;  %4774 = vmatmul.mubr.msk.f32.vlgmr.msra.gmra.mrb[0].mxu1 %vm2443_vm10, %v5321_v29 }
 0x232   :  { %2631 = vmatprep.mubr.f32.mxu1 %v4940_v2  ;;  %v2730_v48 = vsel %vm318_vm3, %v2720_v37, %v2722_v38 }
 0x234   :  { %v2479_v39 = vpop.permute.xlu0 %2478 }
 0x235   :  { %v2477_v40 = vpop.permute.xlu1 %2476 }
 0x236   :  { %v2484_v41 = vsel %vm51_vm0, %v2475_v34, %v2477_v40  ;;  %v2485_v42 = vsel %vm51_vm0, %v2477_v40, %v2479_v39 }
 0x237   :  { %2567 = vmatprep.subr.mxu1 %v2485_v42 }
 0x238   :  { %2568 = vmatpush1.msra.mxu1 %v2484_v41  ;;  %v2718_v43 = vpop.permute.xlu0 %2717 }
 0x239   :  { %v2716_v44 = vpop.permute.xlu1 %2715  ;;  %4775 = vmatmul.mubr.msk.f32.vlgmr.msra.gmra.mrb[2].mxu1 %vm2443_vm10, %v5321_v29  ;;  %v2729_v49 = vsel %vm318_vm3, %v2718_v43, %v2720_v37 }
 0x23a   :  { %2702 = vmatprep.mubr.f32.mxu1 %v4940_v2 }
 0x23c   :  { %v2724_v45 = vpop.permute.xlu0 %2723 }
 0x23d   :  { %v2481_v46 = vpop.permute.xlu1 %2480  ;;  %v2731_v53 = vsel %vm318_vm3, %v2722_v38, %v2724_v45 }
 0x23e   :  { %v2486_v47 = vsel %vm51_vm0, %v2479_v39, %v2481_v46  ;;  %2638 = vmatprep.subr.mxu1 %v2481_v46 }
 0x23f   :  { %2639 = vmatpush1.msra.mxu1 %v2486_v47 }
 0x240   :  { %4776 = vmatmul.mubr.msk.f32.vlgmr.msra.gmra.mrb[4].mxu1 %vm2443_vm10, %v5321_v29  ;;  %2742 = vmatprep.subr.mxu1 %v2730_v48  ;;  %v2968_v50 = vpop.permute.xlu0 %2967 }
 0x241   :  { %v2726_v51 = vpop.permute.xlu1 %2725  ;;  %2743 = vmatpush1.msra.mxu1 %v2729_v49  ;;  %2806 = vmatprep.mubr.f32.mxu1 %v4940_v2 }
 0x242   :  { %v2732_v52 = vsel %vm318_vm3, %v2724_v45, %v2726_v51 }
 0x243   :  { %2813 = vmatprep.subr.mxu1 %v2732_v52 }
 0x244   :  { %4777 = vmatmul.mubr.msk.f32.vlgmr.msra.gmra.mrb[0].mxu1 %vm2443_vm10, %v2716_v44  ;;  %v2728_v54 = vpop.permute.xlu0 %2727 }
 0x245   :  { %2814 = vmatpush1.msra.mxu1 %v2731_v53  ;;  %v2966_v55 = vpop.permute.xlu1 %2965  ;;  %2877 = vmatprep.mubr.f32.mxu1 %v4940_v2  ;;  %v2733_v56 = vsel %vm318_vm3, %v2726_v51, %v2728_v54 }
 0x246   :  { %2884 = vmatprep.subr.mxu1 %v2728_v54  ;;  %v2976_v59 = vsel %vm582_vm4, %v2966_v55, %v2968_v50 }
 0x248   :  { %4778 = vmatmul.mubr.msk.f32.vlgmr.msra.gmra.mrb[2].mxu1 %vm2443_vm10, %v2716_v44  ;;  %v2962_v57 = vpop.permute.xlu0 %2961 }
 0x249   :  { %2885 = vmatpush1.msra.mxu1 %v2733_v56  ;;  %v2964_v58 = vpop.permute.xlu1 %2963  ;;  %2948 = vmatprep.mubr.f32.mxu1 %v4940_v2 }
 0x24a   :  { %v2975_v60 = vsel %vm582_vm4, %v2964_v58, %v2966_v55  ;;  %2988 = vmatprep.subr.mxu1 %v2976_v59 }
 0x24c   :  { %4779 = vmatmul.mubr.msk.f32.vlgmr.msra.gmra.mrb[4].mxu1 %vm2443_vm10, %v2716_v44  ;;  %v2972_v61 = vpop.permute.xlu0 %2971 }
 0x24d   :  { %2989 = vmatpush1.msra.mxu1 %v2975_v60  ;;  %v2970_v62 = vpop.permute.xlu1 %2969  ;;  %3052 = vmatprep.mubr.f32.mxu1 %v4940_v2 }
 0x24e   :  { %v2977_v63 = vsel %vm582_vm4, %v2968_v50, %v2970_v62  ;;  %v2978_v0 = vsel %vm582_vm4, %v2970_v62, %v2972_v61 }
 0x24f   :  { %3059 = vmatprep.subr.mxu1 %v2978_v0 }
 0x250   :  { %4780 = vmatmul.mubr.msk.f32.vlgmr.msra.gmra.mrb[0].mxu1 %vm2443_vm10, %v2962_v57  ;;  %v3226_v1 = vpop.permute.xlu0 %3225 }
 0x251   :  { %3060 = vmatpush1.msra.mxu1 %v2977_v63  ;;  %v3228_v3 = vpop.permute.xlu1 %3227  ;;  %3123 = vmatprep.mubr.f32.mxu1 %v4940_v2 }
 0x252   :  { %v3238_v8 = vsel %vm850_vm5, %v3226_v1, %v3228_v3 }
 0x254   :  { %4781 = vmatmul.mubr.msk.f32.vlgmr.msra.gmra.mrb[2].mxu1 %vm2443_vm10, %v2962_v57  ;;  %v3224_v4 = vpop.permute.xlu0 %3223 }
 0x255   :  { %v2974_v5 = vpop.permute.xlu1 %2973  ;;  %3194 = vmatprep.mubr.f32.mxu1 %v4940_v2  ;;  %v3237_v9 = vsel %vm850_vm5, %v3224_v4, %v3226_v1 }
 0x256   :  { %v2979_v7 = vsel %vm582_vm4, %v2972_v61, %v2974_v5  ;;  %3130 = vmatprep.subr.mxu1 %v2974_v5 }
 0x257   :  { %3131 = vmatpush1.msra.mxu1 %v2979_v7 }
 0x258   :  { %4782 = vmatmul.mubr.msk.f32.vlgmr.msra.gmra.mrb[4].mxu1 %vm2443_vm10, %v2962_v57  ;;  %3251 = vmatprep.subr.mxu1 %v3238_v8  ;;  %v3230_v10 = vpop.permute.xlu0 %3229 }
 0x259   :  { %v3215_v12 = vpop.permute.xlu1 %3214  ;;  %3252 = vmatpush1.msra.mxu1 %v3237_v9  ;;  %3315 = vmatprep.mubr.f32.mxu1 %v4940_v2  ;;  %v3239_v16 = vsel %vm850_vm5, %v3228_v3, %v3230_v10 }
 0x25c   :  { %4783 = vmatmul.mubr.msk.f32.vlgmr.msra.gmra.mrb[0].mxu1 %vm2443_vm10, %v3215_v12  ;;  %v3234_v14 = vpop.permute.xlu0 %3233 }
 0x25d   :  { %v3232_v13 = vpop.permute.xlu1 %3231  ;;  %3386 = vmatprep.mubr.f32.mxu1 %v4940_v2 }
 0x25e   :  { %v3240_v15 = vsel %vm850_vm5, %v3230_v10, %v3232_v13  ;;  %v3241_v23 = vsel %vm850_vm5, %v3232_v13, %v3234_v14 }
 0x25f   :  { %3322 = vmatprep.subr.mxu1 %v3240_v15 }
 0x260   :  { %3323 = vmatpush1.msra.mxu1 %v3239_v16  ;;  %v3471_v17 = vpop.permute.xlu0 %3470 }
 0x261   :  { %v3236_v19 = vpop.permute.xlu1 %3235  ;;  %4784 = vmatmul.mubr.msk.f32.vlgmr.msra.gmra.mrb[2].mxu1 %vm2443_vm10, %v3215_v12 }
 0x262   :  { %v3242_v20 = vsel %vm850_vm5, %v3234_v14, %v3236_v19  ;;  %3457 = vmatprep.mubr.f32.mxu1 %v5468_v21 }
 0x263   :  { %3393 = vmatprep.subr.mxu1 %v3242_v20 }
 0x264   :  { %3394 = vmatpush1.msra.mxu1 %v3241_v23  ;;  %v3700_v2 = vpop.permute.xlu0 %3699 }
 0x265   :  { %v3698_v24 = vpop.permute.xlu1 %3697  ;;  %4785 = vmatmul.mubr.msk.f32.vlgmr.msra.gmra.mrb[4].mxu1 %vm2443_vm10, %v3215_v12  ;;  %3474 = vmatprep.subr.mxu1 %v5297_v11 }
 0x266   :  { %3475 = vmatpush1.msra.mxu1 %v5295_v6  ;;  %3538 = vmatprep.mubr.f32.mxu1 %v5468_v21  ;;  %v3708_v6 = vsel %vm1361_vm6, %v3698_v24, %v3700_v2 }
 0x267   :  { %3545 = vmatprep.subr.mxu1 %v5305_v22 }
 0x268   :  { %v3694_v25 = vpop.permute.xlu0 %3693 }
 0x269   :  { %v3696_v26 = vpop.permute.xlu1 %3695  ;;  %4786 = vmatmul.mubr.msk.f32.vlgmr.msra.gmra.mrb[0].mxu1 %vm2443_vm10, %v3471_v17 }
 0x26a   :  { %3546 = vmatpush1.msra.mxu1 %v5303_v18  ;;  %3609 = vmatprep.mubr.f32.mxu1 %v5468_v21  ;;  %v3707_v22 = vsel %vm1361_vm6, %v3696_v26, %v3698_v24 }
 0x26b   :  { %3616 = vmatprep.subr.mxu1 %v5365_v30 }
 0x26c   :  { %v3704_v28 = vpop.permute.xlu0 %3703 }
 0x26d   :  { %v3702_v29 = vpop.permute.xlu1 %3701  ;;  %4787 = vmatmul.mubr.msk.f32.vlgmr.msra.gmra.mrb[2].mxu1 %vm2443_vm10, %v3471_v17 }
 0x26e   :  { %3617 = vmatpush1.msra.mxu1 %v5311_v27  ;;  %3680 = vmatprep.mubr.f32.mxu1 %v5468_v21  ;;  %v3710_v18 = vsel %vm1361_vm6, %v3702_v29, %v3704_v28  ;;  %v3709_v27 = vsel %vm1361_vm6, %v3700_v2, %v3702_v29 }
 0x26f   :  { %3720 = vmatprep.subr.mxu1 %v3708_v6 }
 0x270   :  { %v3944_v11 = vpop.permute.xlu0 %3943 }
 0x271   :  { %v3946_v31 = vpop.permute.xlu1 %3945  ;;  %4788 = vmatmul.mubr.msk.f32.vlgmr.msra.gmra.mrb[4].mxu1 %vm2443_vm10, %v3471_v17 }
 0x272   :  { %3721 = vmatpush1.msra.mxu1 %v3707_v22  ;;  %3784 = vmatprep.mubr.f32.mxu1 %v5468_v21  ;;  %v3954_v36 = vsel %vm1625_vm7, %v3944_v11, %v3946_v31 }
 0x273   :  { %3791 = vmatprep.subr.mxu1 %v3710_v18 }
 0x274   :  { %v3942_v30 = vpop.permute.xlu0 %3941 }
 0x275   :  { %v3940_v32 = vpop.permute.xlu1 %3939  ;;  %4789 = vmatmul.mubr.msk.f32.vlgmr.msra.gmra.mrb[0].mxu1 %vm2443_vm10, %v3694_v25  ;;  %v3953_v38 = vsel %vm1625_vm7, %v3942_v30, %v3944_v11 }
 0x276   :  { %3792 = vmatpush1.msra.mxu1 %v3709_v27  ;;  %3855 = vmatprep.mubr.f32.mxu1 %v5468_v21 }
 0x278   :  { %v3948_v33 = vpop.permute.xlu0 %3947 }
 0x279   :  { %v3706_v34 = vpop.permute.xlu1 %3705  ;;  %4790 = vmatmul.mubr.msk.f32.vlgmr.msra.gmra.mrb[2].mxu1 %vm2443_vm10, %v3694_v25  ;;  %v3955_v42 = vsel %vm1625_vm7, %v3946_v31, %v3948_v33 }
 0x27a   :  { %v3711_v35 = vsel %vm1361_vm6, %v3704_v28, %v3706_v34  ;;  %3862 = vmatprep.subr.mxu1 %v3706_v34  ;;  %3926 = vmatprep.mubr.f32.mxu1 %v5468_v21 }
 0x27b   :  { %3863 = vmatpush1.msra.mxu1 %v3711_v35 }
 0x27c   :  { %3966 = vmatprep.subr.mxu1 %v3954_v36  ;;  %v4192_v37 = vpop.permute.xlu0 %4191 }
 0x27d   :  { %v3950_v39 = vpop.permute.xlu1 %3949  ;;  %4791 = vmatmul.mubr.msk.f32.vlgmr.msra.gmra.mrb[4].mxu1 %vm2443_vm10, %v3694_v25 }
 0x27e   :  { %3967 = vmatpush1.msra.mxu1 %v3953_v38  ;;  %v3956_v40 = vsel %vm1625_vm7, %v3948_v33, %v3950_v39  ;;  %4030 = vmatprep.mubr.f32.mxu1 %v5468_v21 }
 0x27f   :  { %4037 = vmatprep.subr.mxu1 %v3956_v40 }
 0x280   :  { %v3952_v41 = vpop.permute.xlu0 %3951 }
 0x281   :  { %v4190_v43 = vpop.permute.xlu1 %4189  ;;  %4792 = vmatmul.mubr.msk.f32.vlgmr.msra.gmra.mrb[0].mxu1 %vm2443_vm10, %v3940_v32  ;;  %v3957_v45 = vsel %vm1625_vm7, %v3950_v39, %v3952_v41 }
 0x282   :  { %4038 = vmatpush1.msra.mxu1 %v3955_v42  ;;  %4101 = vmatprep.mubr.f32.mxu1 %v5468_v21  ;;  %v4200_v47 = vsel %vm1889_vm8, %v4190_v43, %v4192_v37 }
 0x283   :  { %4108 = vmatprep.subr.mxu1 %v3952_v41 }
 0x284   :  { %v4186_v44 = vpop.permute.xlu0 %4185 }
 0x285   :  { %v4188_v46 = vpop.permute.xlu1 %4187  ;;  %4793 = vmatmul.mubr.msk.f32.vlgmr.msra.gmra.mrb[2].mxu1 %vm2443_vm10, %v3940_v32 }
 0x286   :  { %4109 = vmatpush1.msra.mxu1 %v3957_v45  ;;  %4172 = vmatprep.mubr.f32.mxu1 %v5468_v21  ;;  %v4199_v49 = vsel %vm1889_vm8, %v4188_v46, %v4190_v43 }
 0x287   :  { %4212 = vmatprep.subr.mxu1 %v4200_v47 }
 0x288   :  { %v4196_v48 = vpop.permute.xlu0 %4195 }
 0x289   :  { %v4194_v50 = vpop.permute.xlu1 %4193  ;;  %4794 = vmatmul.mubr.msk.f32.vlgmr.msra.gmra.mrb[4].mxu1 %vm2443_vm10, %v3940_v32 }
 0x28a   :  { %4213 = vmatpush1.msra.mxu1 %v4199_v49  ;;  %v4202_v51 = vsel %vm1889_vm8, %v4194_v50, %v4196_v48  ;;  %4276 = vmatprep.mubr.f32.mxu1 %v5468_v21  ;;  %v4201_v53 = vsel %vm1889_vm8, %v4192_v37, %v4194_v50 }
 0x28b   :  { %4283 = vmatprep.subr.mxu1 %v4202_v51 }
 0x28c   :  { %v4436_v52 = vpop.permute.xlu0 %4435 }
 0x28d   :  { %v4438_v54 = vpop.permute.xlu1 %4437  ;;  %4795 = vmatmul.mubr.msk.f32.vlgmr.msra.gmra.mrb[0].mxu1 %vm2443_vm10, %v4186_v44 }
 0x28e   :  { %4284 = vmatpush1.msra.mxu1 %v4201_v53  ;;  %4347 = vmatprep.mubr.f32.mxu1 %v5468_v21  ;;  %v4446_v58 = vsel %vm2153_vm9, %v4436_v52, %v4438_v54 }
 0x290   :  { %v4434_v55 = vpop.permute.xlu0 %4433 }
 0x291   :  { %v4198_v56 = vpop.permute.xlu1 %4197  ;;  %4796 = vmatmul.mubr.msk.f32.vlgmr.msra.gmra.mrb[2].mxu1 %vm2443_vm10, %v4186_v44  ;;  %v4445_v60 = vsel %vm2153_vm9, %v4434_v55, %v4436_v52 }
 0x292   :  { %v4203_v57 = vsel %vm1889_vm8, %v4196_v48, %v4198_v56  ;;  %4354 = vmatprep.subr.mxu1 %v4198_v56  ;;  %4418 = vmatprep.mubr.f32.mxu1 %v5468_v21 }
 0x293   :  { %4355 = vmatpush1.msra.mxu1 %v4203_v57 }
 0x294   :  { %4458 = vmatprep.subr.mxu1 %v4446_v58  ;;  %v4440_v59 = vpop.permute.xlu0 %4439 }
 0x295   :  { %v4432_v61 = vpop.permute.xlu1 %4431  ;;  %4797 = vmatmul.mubr.msk.f32.vlgmr.msra.gmra.mrb[4].mxu1 %vm2443_vm10, %v4186_v44  ;;  %v4447_v1 = vsel %vm2153_vm9, %v4438_v54, %v4440_v59 }
 0x296   :  { %4459 = vmatpush1.msra.mxu1 %v4445_v60  ;;  %4522 = vmatprep.mubr.f32.mxu1 %v5468_v21 }
 0x298   :  { %v4444_v63 = vpop.permute.xlu0 %4443 }
 0x299   :  { %v4442_v62 = vpop.permute.xlu1 %4441  ;;  %4798 = vmatmul.mubr.msk.f32.vlgmr.msra.gmra.mrb[0].mxu1 %vm2443_vm10, %v4432_v61 }
 0x29a   :  { %v4448_v0 = vsel %vm2153_vm9, %v4440_v59, %v4442_v62  ;;  %4593 = vmatprep.mubr.f32.mxu1 %v5468_v21  ;;  %v4449_v3 = vsel %vm2153_vm9, %v4442_v62, %v4444_v63 }
 0x29b   :  { %4529 = vmatprep.subr.mxu1 %v4448_v0 }
 0x29c   :  { %4530 = vmatpush1.msra.mxu1 %v4447_v1 }
 0x29d   :  { %4799 = vmatmul.mubr.msk.f32.vlgmr.msra.gmra.mrb[2].mxu1 %vm2443_vm10, %v4432_v61  ;;  %4600 = vmatprep.subr.mxu1 %v4444_v63 }
 0x29e   :  { %4601 = vmatpush1.msra.mxu1 %v4449_v3  ;;  %4664 = vmatprep.mubr.f32.mxu1 %v5468_v21 }
 0x2a1   :  { %4800 = vmatmul.mubr.msk.f32.vlgmr.msra.gmra.mrb[4].mxu1 %vm2443_vm10, %v4432_v61 }
 0x2aa   :  { %v2455_v4 = vpop.permute.xlu1 %2454 }
 0x36c   :  { %v4524_v5 = vpop.f32.mrb[0].mxu1 }
 0x36d   :  { %v4807_v7 = vadd.f32 %v4524_v5, %v2455_v4  ;;  %v4526_v8 = vpop.f32.mrb[1].mxu1 }
 0x36e   :  { %v4808_v9 = vadd.f32 %v4526_v8, %v2455_v4 }
 0x36f   :  { %v4677_v10 = vmax.f32 %v4807_v7, 0.0 }
 0x370   :  { %v4678_v12 = vmax.f32 %v4808_v9, 0.0  ;;  %v4595_v14 = vpop.f32.mrb[2].mxu1 }
 0x371   :  { %4683 = vst [vmem:[%s5554_s6] sm:$0xff] %v4677_v10  ;;  %v4809_v13 = vadd.f32 %v4595_v14, %v2455_v4  ;;  %v4597_v15 = vpop.f32.mrb[3].mxu1 }
 0x372   :  { %4684 = vst [vmem:[%s5554_s6 + $0x8] sm:$0xff] %v4678_v12  ;;  %v4810_v16 = vadd.f32 %v4597_v15, %v2455_v4 }
 0x373   :  { %v4679_v17 = vmax.f32 %v4809_v13, 0.0 }
 0x374   :  { %v4680_v19 = vmax.f32 %v4810_v16, 0.0  ;;  %v4666_v20 = vpop.f32.mrb[4].mxu1 }
 0x375   :  { %4685 = vst [vmem:[%s5554_s6 + $0x10] sm:$0xff] %v4679_v17  ;;  %v4811_v21 = vadd.f32 %v4666_v20, %v2455_v4  ;;  %v4668_v23 = vpop.f32.mrb[5].mxu1 }
 0x376   :  { %4686 = vst [vmem:[%s5554_s6 + $0x18] sm:$0xff] %v4680_v19  ;;  %v4812_v2 = vadd.f32 %v4668_v23, %v2455_v4 }
 0x377   :  { %v4681_v24 = vmax.f32 %v4811_v21, 0.0 }
 0x378   :  { %v4682_v25 = vmax.f32 %v4812_v2, 0.0 }
 0x379   :  { %4687 = vst [vmem:[%s5554_s6 + $0x20] sm:$0xff] %v4681_v24 }
 0x37a   :  { %4688 = vst.msk [vmem:[%s5554_s6 + $0x28] sm:$0xff] %vm2443_vm10, %v4682_v25 }

</bundles_post_ra>
